<compile_context>
chip_gen: v7x
topology: tpu7x:2x2x1
jax: 0.10.0
libtpu: 0.0.40
codegen_flags: <defaults>
</compile_context>

<pallas_src>
import functools

import jax
import jax.numpy as jnp
from jax.experimental import pallas as pl
from jax.experimental.pallas import tpu as pltpu

LANE = 128
SUBLANE = 8
TILE_ELEMS = SUBLANE * LANE            # 1024
MAX_BLOCK_ROWS = 4096                  # (4096, 128) f32 tile = 2 MiB per input buffer
VMEM_LIMIT_BYTES = 32 * 1024 * 1024    # safe on v5e/v6e/v7x; leaves headroom for intermediates
MIN_PALLAS_ELEMS = 16384               # below this, pallas_call fixed cost dominates; raise
                                       # toward ~256K in production if preferred.


def _bce_block_kernel(pred_ref, targ_ref, out_ref, *, valid_rows, needs_mask):
    """One grid step: BCE over a (block_rows, 128) tile, reduced to (8, 128) partials."""
    block_rows = pred_ref.shape[0]

    p = pred_ref[...].astype(jnp.float32)
    y = targ_ref[...].astype(jnp.float32)

    # torch.nn.BCELoss clamps each log term at -100.
    log_p = jnp.maximum(jnp.log(p), -100.0)
    log_1mp = jnp.maximum(jnp.log(1.0 - p), -100.0)
    term = -(y * log_p + (1.0 - y) * log_1mp)

    if needs_mask:
        # Only the trailing block can contain out-of-bounds rows; mask by row
        # index against a scalar limit (select also kills any NaN/inf computed
        # from the unspecified OOB contents).
        i = pl.program_id(0)
        limit = valid_rows - i * block_rows
        row = jax.lax.broadcasted_iota(jnp.int32, term.shape, 0)
        term = jnp.where(row < limit, term, 0.0)

    # (block_rows, 128) -> (8, 128): sum over sublane groups. The reshape keeps
    # (8, 128) vreg tiles intact, so this lowers to plain VPU adds across vregs.
    out_ref[...] = term.reshape(block_rows // SUBLANE, SUBLANE, LANE).sum(axis=0)


def _choose_blocking(rows):
    """rows is a multiple of 8. Returns static (block_rows, grid, needs_mask)."""
    cap = min(MAX_BLOCK_ROWS, rows)
    if rows >= 2 * SUBLANE:
        # Force grid >= 2 so the 'parallel' grid axis can use both v7x TensorCores.
        cap = min(cap, (rows // 2) // SUBLANE * SUBLANE)
    cap = max(cap, SUBLANE)

    # Prefer the largest multiple-of-8 divisor of rows <= cap: grid*block_rows == rows
    # exactly, so the in-kernel mask disappears statically.
    best = 0
    for d in range(cap, SUBLANE - 1, -SUBLANE):
        if rows % d == 0:
            best = d
            break
    if best >= min(256, cap):
        return best, rows // best, False

    # Awkward row counts (no decent divisor): big blocks + row-masked trailing block.
    grid = (rows + cap - 1) // cap
    return cap, grid, (grid * cap != rows)


def _bce_sum_pallas(p2d, y2d, rows):
    """Sum of clamped BCE terms over a (rows, 128) aligned slab via Pallas."""
    block_rows, grid, needs_mask = _choose_blocking(rows)
    kernel = functools.partial(_bce_block_kernel, valid_rows=rows, needs_mask=needs_mask)

    in_spec = pl.BlockSpec((block_rows, LANE), lambda i: (i, 0))
    out_spec = pl.BlockSpec((SUBLANE, LANE), lambda i: (i, 0))

    n_elems = rows * LANE
    bytes_in = n_elems * (p2d.dtype.itemsize + y2d.dtype.itemsize)
    cost = pl.CostEstimate(
        flops=8 * n_elems,
        transcendentals=2 * n_elems,
        bytes_accessed=bytes_in + grid * SUBLANE * LANE * 4,
    )

    partials = pl.pallas_call(
        kernel,
        out_shape=jax.ShapeDtypeStruct((grid * SUBLANE, LANE), jnp.float32),
        grid_spec=pltpu.PrefetchScalarGridSpec(
            num_scalar_prefetch=0,
            grid=(grid,),
            in_specs=[in_spec, in_spec],
            out_specs=out_spec,
        ),
        compiler_params=pltpu.CompilerParams(
            dimension_semantics=("parallel",),
            vmem_limit_bytes=VMEM_LIMIT_BYTES,
        ),
        cost_estimate=cost,
    )(p2d, y2d)

    return jnp.sum(partials)


def _bce_sum_jnp(p, y):
    """Sum of clamped BCE terms (torch BCELoss semantics), plain jnp."""
    p = p.astype(jnp.float32)
    y = y.astype(jnp.float32)
    log_p = jnp.maximum(jnp.log(p), -100.0)
    log_1mp = jnp.maximum(jnp.log(1.0 - p), -100.0)
    return jnp.sum(-(y * log_p + (1.0 - y) * log_1mp))


def _bce_mean_jnp(pred, target):
    """Plain-jnp BCE mean with the same -100 log clamp (small tensors / reference)."""
    return _bce_sum_jnp(pred, target) / jnp.float32(max(int(pred.size), 1))


def _bce_mean_pallas(pred, target, *, min_pallas_elems=MIN_PALLAS_ELEMS):
    """Mean-reduced BCE (torch BCELoss semantics) via a Pallas streaming reduction."""
    n = int(pred.size)
    if n < max(min_pallas_elems, TILE_ELEMS):
        # pallas_call dispatch + pipeline prologue/epilogue dominates here.
        return _bce_mean_jnp(pred, target)

    flat_p = pred.reshape(-1)
    flat_y = target.reshape(-1)

    # Aligned prefix goes through Pallas; the (<1024-element) tail is folded in
    # with plain jnp. No jnp.pad -> no extra full HBM pass over the inputs.
    n_main = (n // TILE_ELEMS) * TILE_ELEMS
    rows = n_main // LANE  # multiple of 8

    if n_main == n:  # common aligned case: pure reshape, no slice
        p2d = flat_p.reshape(rows, LANE)
        y2d = flat_y.reshape(rows, LANE)
    else:
        p2d = flat_p[:n_main].reshape(rows, LANE)
        y2d = flat_y[:n_main].reshape(rows, LANE)

    total = _bce_sum_pallas(p2d, y2d, rows)

    if n_main != n:  # static
        total = total + _bce_sum_jnp(flat_p[n_main:], flat_y[n_main:])

    return total / jnp.float32(n)


class LocalizationDetectionBCELossPallas:
    """JAX/Pallas port of omgfuser.losses.LocalizationDetectionBCELoss (BCE_LOSS)."""

    def __init__(self,
                 detection_loss_weight: float = 1.0,
                 localization_loss_weight: float = 1.0,
                 pallas_min_elems: int = MIN_PALLAS_ELEMS):
        self.detection_loss_weight = float(detection_loss_weight)
        self.localization_loss_weight = float(localization_loss_weight)
        self.pallas_min_elems = int(pallas_min_elems)

    def __call__(self, predicted_map, predicted_class, actual_map, actual_class):
        # Big localization map -> Pallas streaming reduction.
        loc_loss = _bce_mean_pallas(predicted_map, actual_map,
                                    min_pallas_elems=self.pallas_min_elems)
        # Detection head is [N, 1] (a handful of elements): plain jnp; a second
        # Pallas launch here would be pure fixed overhead.
        det_loss = _bce_mean_jnp(predicted_class, actual_class)
        return (loc_loss * self.localization_loss_weight
                + det_loss * self.detection_loss_weight)


if __name__ == "__main__":
    key = jax.random.PRNGKey(0)
    k1, k2, k3, k4, k5, k6 = jax.random.split(key, 6)

    loss_fn = LocalizationDetectionBCELossPallas(
        detection_loss_weight=1.0, localization_loss_weight=1.0)
    jitted = jax.jit(loss_fn.__call__)

    # Case 1: aligned map (exercises the no-mask exact-divisor Pallas path, grid=2).
    #   predicted_map / actual_map    : NCHW [2, 1, 128, 128], values in (0, 1)
    #   predicted_class / actual_class: [2, 1], values in (0, 1)
    N, C, H, W = 2, 1, 128, 128
    predicted_map = jax.nn.sigmoid(jax.random.normal(k1, (N, C, H, W), jnp.float32))
    actual_map = (jax.random.uniform(k2, (N, C, H, W)) > 0.5).astype(jnp.float32)
    predicted_class = jax.nn.sigmoid(jax.random.normal(k3, (N, 1), jnp.float32))
    actual_class = (jax.random.uniform(k4, (N, 1)) > 0.5).astype(jnp.float32)

    loss = jax.block_until_ready(
        jitted(predicted_map, predicted_class, actual_map, actual_class))
    ref = (_bce_mean_jnp(predicted_map, actual_map)
           + _bce_mean_jnp(predicted_class, actual_class))
    assert jnp.allclose(loss, ref, rtol=1e-4, atol=1e-5), (loss, ref)

    # Case 2: non-(8*128)-aligned map (exercises prefix + jnp tail + row-masked
    # trailing Pallas block).
    N2, H2, W2 = 3, 100, 100
    pm2 = jax.nn.sigmoid(jax.random.normal(k5, (N2, 1, H2, W2), jnp.float32))
    am2 = (jax.random.uniform(k6, (N2, 1, H2, W2)) > 0.5).astype(jnp.float32)
    loss2 = jax.block_until_ready(
        jitted(pm2, predicted_class, am2, actual_class))
    ref2 = (_bce_mean_jnp(pm2, am2)
            + _bce_mean_jnp(predicted_class, actual_class))
    assert jnp.allclose(loss2, ref2, rtol=1e-4, atol=1e-5), (loss2, ref2)

    print("KERNEL_OK")
</pallas_src>

<mosaic_0001>
module attributes {stable_mosaic.version = 11 : i64} {
  func.func @_bce_block_kernel(%arg0: i32, %arg1: memref<128x128xf32, #tpu.memory_space<vmem>>, %arg2: memref<128x128xf32, #tpu.memory_space<vmem>>, %arg3: memref<8x128xf32, #tpu.memory_space<vmem>>) attributes {dimension_semantics = [#tpu.dimension_semantics<parallel>], iteration_bounds = array<i64: 2>, scalar_prefetch = 0 : i64, scratch_operands = 0 : i64, tpu.core_type = #tpu.core_type<tc>, window_params = [{transform_indices = @transform_0, window_bounds = array<i64: 128, 128>}, {transform_indices = @transform_1, window_bounds = array<i64: 128, 128>}, {transform_indices = @transform_2, window_bounds = array<i64: 8, 128>}]} {
    %c0 = arith.constant 0 : index
    %c0_0 = arith.constant 0 : index
    %0 = vector.load %arg1[%c0, %c0_0] : memref<128x128xf32, #tpu.memory_space<vmem>>, vector<128x128xf32>
    %c0_1 = arith.constant 0 : index
    %c0_2 = arith.constant 0 : index
    %1 = vector.load %arg2[%c0_1, %c0_2] : memref<128x128xf32, #tpu.memory_space<vmem>>, vector<128x128xf32>
    %2 = math.log %0 : vector<128x128xf32>
    %cst = arith.constant -1.000000e+02 : f32
    %3 = vector.broadcast %cst : f32 to vector<128x128xf32>
    %4 = arith.maximumf %2, %3 : vector<128x128xf32>
    %cst_3 = arith.constant 1.000000e+00 : f32
    %5 = vector.broadcast %cst_3 : f32 to vector<128x128xf32>
    %6 = arith.subf %5, %0 : vector<128x128xf32>
    %7 = math.log %6 : vector<128x128xf32>
    %cst_4 = arith.constant -1.000000e+02 : f32
    %8 = vector.broadcast %cst_4 : f32 to vector<128x128xf32>
    %9 = arith.maximumf %7, %8 : vector<128x128xf32>
    %10 = arith.mulf %1, %4 : vector<128x128xf32>
    %cst_5 = arith.constant 1.000000e+00 : f32
    %11 = vector.broadcast %cst_5 : f32 to vector<128x128xf32>
    %12 = arith.subf %11, %1 : vector<128x128xf32>
    %13 = arith.mulf %12, %9 : vector<128x128xf32>
    %14 = arith.addf %10, %13 : vector<128x128xf32>
    %cst_6 = arith.constant 0.000000e+00 : f32
    %15 = vector.broadcast %cst_6 : f32 to vector<128x128xf32>
    %16 = arith.subf %15, %14 : vector<128x128xf32>
    %17 = vector.shape_cast %16 : vector<128x128xf32> to vector<16x8x128xf32>
    %cst_7 = arith.constant dense<0.000000e+00> : vector<8x128xf32>
    %18 = vector.multi_reduction <add>, %17, %cst_7 [0] : vector<16x8x128xf32> to vector<8x128xf32>
    %c0_8 = arith.constant 0 : index
    %c0_9 = arith.constant 0 : index
    %19 = vector.load %arg3[%c0_8, %c0_9] : memref<8x128xf32, #tpu.memory_space<vmem>>, vector<8x128xf32>
    tpu.vector_store %arg3[%c0_8, %c0_9], %18 {strides = array<i32>} : memref<8x128xf32, #tpu.memory_space<vmem>>, vector<8x128xf32>,
    return
  }
  func.func @transform_0(%arg0: i32) -> (i32, i32) {
    %c0_i32 = arith.constant 0 : i32
    %c0_i32_0 = arith.constant 0 : i32
    return %arg0, %c0_i32 : i32, i32
  }
  func.func @transform_1(%arg0: i32) -> (i32, i32) {
    %c0_i32 = arith.constant 0 : i32
    %c0_i32_0 = arith.constant 0 : i32
    return %arg0, %c0_i32 : i32, i32
  }
  func.func @transform_2(%arg0: i32) -> (i32, i32) {
    %c0_i32 = arith.constant 0 : i32
    %c0_i32_0 = arith.constant 0 : i32
    return %arg0, %c0_i32 : i32, i32
  }
}

</mosaic_0001>

<bundles_post_ra>
// kernel: a_call__.1
= control target key start
LH: loop header
LB: loop body
LE: loop exit
PB: predicated region body
PF: predicated region fallthrough
CT: control target
= control target key end

     0   :  { %7 = vsyncpa [#allocation3], 0  ;;  %s1127_s0 = inlined_call_operand.hbm [shape: f32[256,128], index: 0, kind: input, shape index: {}]   ;;  %s1128_s1 = inlined_call_operand.hbm [shape: f32[256,128], index: 1, kind: input, shape index: {}]   ;;  %s1129_s2 = inlined_call_operand.vmem [shape: f32[16,128], index: 2, kind: output, shape index: {}]  }
   0x1   :  { %9 = vsyncpa [#allocation3 + $0x1], 0 }
   0x2   :  { %10 = vsyncpa [#allocation5], 0 }
   0x3   :  { %12 = vsyncpa [#allocation5 + $0x1], 0  ;;  %s778_s9 = smov 0   ;;  %s780_s10 = smov 0  }
   0x4   :  { %s782_s11 = smov 0   ;;  %s784_s12 = smov 0  }
   0x5 LB: > { %s797_s13 = sadd.s32 4294967295, %s757_s12   ;;  %s800_s14 = sadd.s32 1, %s757_s12   ;;  %s757_s12 = sphi %s784_s12, %s1143_s12   ;;  %s753_s11 = sphi %s782_s11, %s1142_s11   ;;  %s749_s10 = sphi %s780_s10, %s1141_s10   ;;  %s745_s9 = sphi %s778_s9, %s1140_s9  }
   0x6   : > { %s22_s15 = ssub.s32 %s757_s12, %s800_s14  ;;  %s25_s16 = sadd.s32 1, %s753_s11 }
   0x7   : > { %p23_p0 = scmp.eq.s32.totalorder %s22_s15, 0  ;;  %p32_p1 = scmp.ne.s32.totalorder %s753_s11, %s749_s10 }
   0x8   : > { %p33_p2 = scmp.eq.s32.totalorder %s757_s12, 0  ;;  %p38_p3 = scmp.ne.s32.totalorder %s749_s10, %s745_s9 }
   0x9   : > { %s810_s17 = scalar_select %p23_p0, %s753_s11, %s25_s16  }
   0xa   : > { %p34_p4 = por %p33_p2, %p32_p1  ;;  %p39_p5 = scmp.eq.s32.totalorder %s797_s13, 0 }
   0xb   : > { %p560_p6 = scmp.lt.s32.totalorder %s757_s12, 2  ;;  %s819_s19 = sand.u32 1, %s753_s11  }
   0xc   : > { %p814_p7 = por %p39_p5, %p38_p3  ;;  %s535_s20 = sshll.u32 %s819_s19, 7 }
   0xd   : > { %s547_s21 = sshll.u32 %s757_s12, 11  ;;  %s118_s25 = scalar_lea.vmem [#allocation2], %s535_s20 }
   0xe   : > { %s1131_s18 = scalar_select %p814_p7, 1, 0 }
   0xf   : > { %s828_s24 = scalar_lea.hbm %s1127_s0, %s547_s21  ;;  %s125_s26 = sshll.u32 %s118_s25, 4  ;;  %s832_s26 = int_to_ptr.vmem [resolvable:$true] %s125_s26 }
  0x10   : > { %p834_p8 = pnand %p560_p6, %p34_p4  ;;  %s115_s28 = scalar_lea.sflag [#allocation3], %s819_s19 }
  0x11   : > { %s659_s29 = scalar_lea.hbm %s828_s24, 2048  ;;  %s664_s4 = scalar_lea.hbm %s1127_s0, 4096 }
  0x12   : > { %p660_p10 = scmp.ne.s32.totalorder %s828_s24, %s659_s29  ;;  %p661_p11 = pneg %p834_p8 }
  0x13   : > { %p665_p0 = scmp.lt.u32.totalorder %s828_s24, %s1127_s0  ;;  %p666_p1 = scmp.lt.u32.totalorder %s664_s4, %s659_s29 }
  0x14   : > { %p662_p12 = pnand %p661_p11, %p660_p10  ;;  %p668_p3 = scmp.lt.u32.totalorder %s659_s29, %s828_s24 }
  0x15   : > { %p667_p2 = por %p666_p1, %p665_p0 }
  0x16   : > { %p663_p13 = pneg %p662_p12 }
  0x17   : > { %p669_p4 = por %p668_p3, %p667_p2 }
  0x19   : > { %p670_p5 = pnand %p669_p4, %p663_p13 }
  0x1b   : > { %673 = shalt.err (!%p670_p5)
}
  0x1c   : > { %s674_s7 = scalar_lea.vmem %s832_s26, 2048  ;;  %s759_s8 = smov [#allocation2]  }
  0x1d   : > { %p675_p6 = scmp.ne.s32.totalorder %s832_s26, %s674_s7  ;;  %s679_s9 = sshll.u32 %s759_s8, 4  ;;  %s680_s9 = int_to_ptr.vmem [resolvable:$false] %s679_s9 }
  0x1e   : > { %s681_s15 = scalar_lea.vmem %s680_s9, 4096  ;;  %p682_p9 = scmp.lt.s32.totalorder %s832_s26, %s680_s9 }
  0x1f   : > { %p677_p10 = pnand %p675_p6, %p661_p11  ;;  %p683_p0 = scmp.lt.s32.totalorder %s681_s15, %s674_s7 }
  0x21   : > { %p678_p12 = pneg %p677_p10  ;;  %p684_p1 = por %p683_p0, %p682_p9 }
  0x23   : > { %p685_p2 = pnand %p684_p1, %p678_p12 }
  0x25   : > { %688 = shalt.err (!%p685_p2)
}
  0x26   : > { %s760_s16 = smov 128   ;;  %s761_s22 = smov 8  }
  0x27   : > { %556 = dma.hbm_to_vmem [thread:$0]  (!%p834_p8), %s828_s24, 2048, %s832_s26, %s115_s28, %s760_s16, %s760_s16, %s761_s22  }
  0x28   : > { %p154_p9 = scmp.lt.s32.totalorder %s757_s12, 3  ;;  %s876_s29 = scalar_lea.hbm %s1128_s1, %s547_s21 }
  0x29   : > { %p1133_p13 = scmp.ge.s32.totalorder %s757_s12, 1  ;;  %s139_s3 = scalar_lea.vmem [#allocation4], %s535_s20 }
  0x2a   : > { %s146_s4 = sshll.u32 %s139_s3, 4  ;;  %s136_s24 = scalar_lea.sflag [#allocation5], %s819_s19  ;;  %s886_s4 = int_to_ptr.vmem [resolvable:$true] %s146_s4 }
  0x2b   : > { %p880_p3 = pnand %p1133_p13, %p154_p9  ;;  %s689_s26 = scalar_lea.hbm %s876_s29, 2048 }
  0x2c   : > { %p690_p4 = scmp.ne.s32.totalorder %s876_s29, %s689_s26  ;;  %s694_s28 = scalar_lea.hbm %s1128_s1, 4096 }
  0x2d   : > { %p695_p10 = scmp.lt.u32.totalorder %s876_s29, %s1128_s1  ;;  %p696_p12 = scmp.lt.u32.totalorder %s694_s28, %s689_s26 }
  0x2e   : > { %p692_p5 = pnand %p690_p4, %p661_p11  ;;  %p698_p1 = scmp.lt.u32.totalorder %s689_s26, %s876_s29 }
  0x2f   : > { %p697_p0 = por %p696_p12, %p695_p10 }
  0x30   : > { %p693_p6 = pneg %p692_p5 }
  0x31   : > { %p699_p2 = por %p698_p1, %p697_p0 }
  0x33   : > { %p700_p9 = pnand %p699_p2, %p693_p6 }
  0x35   : > { %703 = shalt.err (!%p700_p9)
}
  0x36   : > { %s704_s20 = scalar_lea.vmem %s886_s4, 2048  ;;  %s762_s7 = smov [#allocation4]  }
  0x37   : > { %p705_p13 = scmp.ne.s32.totalorder %s886_s4, %s704_s20  ;;  %s709_s8 = sshll.u32 %s762_s7, 4  ;;  %s710_s8 = int_to_ptr.vmem [resolvable:$false] %s709_s8 }
  0x38   : > { %s711_s9 = scalar_lea.vmem %s710_s8, 4096  ;;  %p712_p7 = scmp.lt.s32.totalorder %s886_s4, %s710_s8 }
  0x39   : > { %p707_p4 = pnand %p705_p13, %p661_p11  ;;  %p713_p10 = scmp.lt.s32.totalorder %s711_s9, %s704_s20 }
  0x3b   : > { %p708_p5 = pneg %p707_p4  ;;  %p714_p12 = por %p713_p10, %p712_p7 }
  0x3d   : > { %p715_p0 = pnand %p714_p12, %p708_p5 }
  0x3f   : > { %718 = shalt.err (!%p715_p0)
}
  0x40   : > { %559 = dma.hbm_to_vmem [thread:$0]  (!%p834_p8), %s876_s29, 2048, %s886_s4, %s136_s24, %s760_s16, %s760_s16, %s761_s22  }
  0x41   : > { %158 = sbr.rel (%p880_p3) target bundleno = 147 (0x93), region = 28  ;;  %s160_s15 = sand.u32 (!%p880_p3), 1, %s749_s10  }
  0x42   : > { %s542_s23 = sshll.u32 (!%p880_p3), %s160_s15, 7  ;;  %s161_s25 = scalar_lea.sflag (!%p880_p3), [#allocation3], %s160_s15 }
  0x43   : > { %s920_s3 = scalar_lea.vmem (!%p880_p3), [#allocation2], %s542_s23  ;;  %p1135_p7 = scmp.ne.s32.totalorder (!%p880_p3), %s1131_s18, 0 }
  0x48   : > { %736 = dma.done.wait (%p1135_p7), %s161_s25, 2048  }
  0x49   : > { %738 = vsyncadd (%p1135_p7), %s161_s25, 4294965248  ;;  %s170_s19 = scalar_lea.sflag [#allocation5], %s160_s15  ;;  %s926_s27 = scalar_lea.vmem [#allocation4], %s542_s23 }
  0x4a   : > { %740 = dma.done.wait (%p1135_p7), %s170_s19, 2048  }
  0x4b   : > { %742 = vsyncadd (%p1135_p7), %s170_s19, 4294965248  ;;  %v204_v0 = vld [vmem:[%s920_s3] sm:$0xff]  ;;  %v205_v1 = vld [vmem:[%s920_s3 + $0x8] sm:$0xff]  ;;  %p200_p8 = scmp.lt.s32.totalorder %s797_s13, 1 }
  0x4c   : > { %595 = vlog2.f32 %v204_v0  ;;  %v206_v2 = vld [vmem:[%s920_s3 + $0x10] sm:$0xff]  ;;  %v207_v3 = vld [vmem:[%s920_s3 + $0x18] sm:$0xff]  ;;  %v208_v4 = vld [vmem:[%s920_s3 + $0x20] sm:$0xff]  ;;  %v284_v7 = vsub.f32 1.0, %v204_v0  ;;  %v285_v9 = vsub.f32 1.0, %v205_v1 }
  0x4d   : > { %597 = vlog2.f32 %v205_v1  ;;  %v209_v5 = vld [vmem:[%s920_s3 + $0x28] sm:$0xff]  ;;  %v939_v6 = vld [vmem:[%s920_s3 + $0x30] sm:$0xff]  ;;  %v942_v8 = vld [vmem:[%s920_s3 + $0x38] sm:$0xff]  ;;  %v286_v11 = vsub.f32 1.0, %v206_v2  ;;  %v287_v12 = vsub.f32 1.0, %v207_v3  ;;  %v288_v16 = vsub.f32 1.0, %v208_v4 }
  0x4e   : > { %599 = vlog2.f32 %v206_v2  ;;  %v946_v10 = vld [vmem:[%s920_s3 + $0x40] sm:$0xff]  ;;  %v951_v15 = vld [vmem:[%s920_s3 + $0x48] sm:$0xff]  ;;  %v954_v18 = vld [vmem:[%s920_s3 + $0x50] sm:$0xff]  ;;  %v289_v25 = vsub.f32 1.0, %v209_v5  ;;  %v290_v26 = vsub.f32 1.0, %v939_v6  ;;  %v291_v31 = vsub.f32 1.0, %v942_v8 }
  0x4f   : > { %601 = vlog2.f32 %v207_v3  ;;  %v957_v19 = vld [vmem:[%s920_s3 + $0x58] sm:$0xff]  ;;  %v960_v20 = vld [vmem:[%s920_s3 + $0x60] sm:$0xff]  ;;  %v964_v22 = vld [vmem:[%s920_s3 + $0x68] sm:$0xff]  ;;  %v292_v32 = vsub.f32 1.0, %v946_v10  ;;  %v293_v33 = vsub.f32 1.0, %v951_v15  ;;  %v294_v38 = vsub.f32 1.0, %v954_v18 }
  0x50   : > { %603 = vlog2.f32 %v208_v4  ;;  %v967_v23 = vld [vmem:[%s920_s3 + $0x70] sm:$0xff]  ;;  %v970_v24 = vld [vmem:[%s920_s3 + $0x78] sm:$0xff]  ;;  %v974_v28 = vld [vmem:[%s926_s27] sm:$0xff]  ;;  %v295_v39 = vsub.f32 1.0, %v957_v19  ;;  %v296_v40 = vsub.f32 1.0, %v960_v20  ;;  %v297_v43 = vsub.f32 1.0, %v964_v22 }
  0x51   : > { %605 = vlog2.f32 %v209_v5  ;;  %v977_v29 = vld [vmem:[%s926_s27 + $0x8] sm:$0xff]  ;;  %v980_v30 = vld [vmem:[%s926_s27 + $0x10] sm:$0xff]  ;;  %v987_v35 = vld [vmem:[%s926_s27 + $0x18] sm:$0xff]  ;;  %v298_v44 = vsub.f32 1.0, %v967_v23  ;;  %v299_v45 = vsub.f32 1.0, %v970_v24  ;;  %v364_v49 = vsub.f32 1.0, %v974_v28 }
  0x52   : > { %607 = vlog2.f32 %v939_v6  ;;  %v990_v36 = vld [vmem:[%s926_s27 + $0x20] sm:$0xff]  ;;  %v993_v37 = vld [vmem:[%s926_s27 + $0x28] sm:$0xff]  ;;  %v1001_v42 = vld [vmem:[%s926_s27 + $0x30] sm:$0xff]  ;;  %v365_v50 = vsub.f32 1.0, %v977_v29  ;;  %v366_v51 = vsub.f32 1.0, %v980_v30  ;;  %v367_v55 = vsub.f32 1.0, %v987_v35 }
  0x53   : > { %609 = vlog2.f32 %v942_v8  ;;  %v1010_v47 = vld [vmem:[%s926_s27 + $0x38] sm:$0xff]  ;;  %v1013_v48 = vld [vmem:[%s926_s27 + $0x40] sm:$0xff]  ;;  %v1021_v53 = vld [vmem:[%s926_s27 + $0x48] sm:$0xff]  ;;  %v368_v56 = vsub.f32 1.0, %v990_v36  ;;  %v369_v57 = vsub.f32 1.0, %v993_v37  ;;  %v370_v62 = vsub.f32 1.0, %v1001_v42 }
  0x54   : > { %611 = vlog2.f32 %v946_v10  ;;  %v1024_v54 = vld [vmem:[%s926_s27 + $0x50] sm:$0xff]  ;;  %v1031_v59 = vld [vmem:[%s926_s27 + $0x58] sm:$0xff]  ;;  %v371_v1 = vsub.f32 1.0, %v1010_v47  ;;  %v372_v2 = vsub.f32 1.0, %v1013_v48  ;;  %v1037_v4 = vld [vmem:[%s926_s27 + $0x60] sm:$0xff]  ;;  %s1145_s13 = smov (!%p200_p8, %s797_s13), 1 }
  0x55   : > { %613 = vlog2.f32 %v284_v7  ;;  %s544_s18 = sshll.u32 %s1145_s13, 3 }
  0x56   : > { %v596_v13 = vpop.eup %595  ;;  %615 = vlog2.f32 %v285_v9  ;;  %v1043_v9 = vld [vmem:[%s926_s27 + $0x68] sm:$0xff]  ;;  %s203_s29 = scalar_lea.vmem %s1129_s2, %s544_s18 }
  0x57   : > { %v598_v14 = vpop.eup %597  ;;  %617 = vlog2.f32 %v286_v11  ;;  %v237_v60 = vmul.f32 0.6931472, %v596_v13 }
  0x58   : > { %v600_v17 = vpop.eup %599  ;;  %619 = vlog2.f32 %v951_v15  ;;  %v239_v61 = vmul.f32 0.6931472, %v598_v14 }
  0x59   : > { %v602_v21 = vpop.eup %601  ;;  %621 = vlog2.f32 %v287_v12  ;;  %v241_v0 = vmul.f32 0.6931472, %v600_v17  ;;  %v268_v15 = vmax.f32 %v237_v60, -100.0 }
  0x5a   : > { %v604_v27 = vpop.eup %603  ;;  %623 = vlog2.f32 %v954_v18  ;;  %v243_v5 = vmul.f32 0.6931472, %v602_v21 }
  0x5b   : > { %v606_v34 = vpop.eup %605  ;;  %625 = vlog2.f32 %v288_v16  ;;  %v245_v14 = vmul.f32 0.6931472, %v604_v27  ;;  %v269_v16 = vmax.f32 %v239_v61, -100.0  ;;  %v270_v21 = vmax.f32 %v241_v0, -100.0 }
  0x5c   : > { %v998_v41 = vpop.eup %607  ;;  %627 = vlog2.f32 %v957_v19  ;;  %v247_v7 = vmul.f32 0.6931472, %v606_v34  ;;  %v271_v6 = vmax.f32 %v243_v5, -100.0  ;;  %v348_v0 = vmul.f32 %v268_v15, %v974_v28 }
  0x5d   : > { %v1007_v46 = vpop.eup %609  ;;  %629 = vlog2.f32 %v289_v25  ;;  %v249_v61 = vmul.f32 0.6931472, %v998_v41  ;;  %v349_v34 = vmul.f32 %v269_v16, %v977_v29 }
  0x5e   : > { %v1018_v52 = vpop.eup %611  ;;  %631 = vlog2.f32 %v960_v20  ;;  %v351_v41 = vmul.f32 %v271_v6, %v987_v35 }
  0x5f   : > { %v614_v58 = vpop.eup %613  ;;  %633 = vlog2.f32 %v290_v26 }
  0x60   : > { %v616_v63 = vpop.eup %615  ;;  %635 = vlog2.f32 %v291_v31  ;;  %v301_v10 = vmul.f32 0.6931472, %v614_v58  ;;  %v377_v58 = vsub.f32 1.0, %v1043_v9 }
  0x61   : > { %v618_v3 = vpop.eup %617  ;;  %637 = vlog2.f32 %v964_v22  ;;  %v303_v11 = vmul.f32 0.6931472, %v616_v63 }
  0x62   : > { %v620_v8 = vpop.eup %619  ;;  %639 = vlog2.f32 %v967_v23  ;;  %v305_v25 = vmul.f32 0.6931472, %v618_v3  ;;  %v332_v27 = vmax.f32 %v301_v10, -100.0  ;;  %v273_v10 = vmax.f32 %v247_v7, -100.0 }
  0x63   : > { %v622_v13 = vpop.eup %621  ;;  %641 = vlog2.f32 %v292_v32  ;;  %v333_v32 = vmax.f32 %v303_v11, -100.0 }
  0x64   : > { %v624_v17 = vpop.eup %623  ;;  %643 = vlog2.f32 %v293_v33  ;;  %v307_v12 = vmul.f32 0.6931472, %v622_v13  ;;  %v272_v33 = vmax.f32 %v245_v14, -100.0  ;;  %v334_v5 = vmax.f32 %v305_v25, -100.0 }
  0x65   : > { %v626_v31 = vpop.eup %625  ;;  %645 = vlog2.f32 %v970_v24  ;;  %v350_v13 = vmul.f32 %v270_v21, %v980_v30  ;;  %v380_v16 = vmul.f32 %v364_v49, %v332_v27  ;;  %v381_v19 = vmul.f32 %v365_v50, %v333_v32 }
  0x66   : > { %v628_v63 = vpop.eup %627  ;;  %647 = vlog2.f32 %v294_v38  ;;  %v309_v26 = vmul.f32 0.6931472, %v626_v31  ;;  %v251_v38 = vmul.f32 0.6931472, %v1007_v46  ;;  %v335_v15 = vmax.f32 %v307_v12, -100.0 }
  0x67   : > { %v630_v60 = vpop.eup %629  ;;  %649 = vlog2.f32 %v295_v39  ;;  %v253_v21 = vmul.f32 0.6931472, %v1018_v52  ;;  %v255_v25 = vmul.f32 0.6931472, %v620_v8  ;;  %v274_v46 = vmax.f32 %v249_v61, -100.0 }
  0x68   : > { %v632_v3 = vpop.eup %631  ;;  %651 = vlog2.f32 %v296_v40  ;;  %v311_v14 = vmul.f32 0.6931472, %v630_v60  ;;  %v352_v7 = vmul.f32 %v272_v33, %v990_v36  ;;  %v336_v6 = vmax.f32 %v309_v26, -100.0 }
  0x69   : > { %v634_v18 = vpop.eup %633  ;;  %653 = vlog2.f32 %v297_v43  ;;  %v382_v28 = vmul.f32 %v366_v51, %v334_v5  ;;  %v275_v12 = vmax.f32 %v251_v38, -100.0  ;;  %v353_v50 = vmul.f32 %v273_v10, %v993_v37 }
  0x6a   : > { %v636_v11 = vpop.eup %635  ;;  %v313_v40 = vmul.f32 0.6931472, %v634_v18  ;;  %655 = vlog2.f32 %v298_v44  ;;  %v337_v8 = vmax.f32 %v311_v14, -100.0  ;;  %v383_v31 = vmul.f32 %v367_v55, %v335_v15 }
  0x6b   : > { %v638_v39 = vpop.eup %637  ;;  %v315_v29 = vmul.f32 0.6931472, %v636_v11  ;;  %v396_v27 = vadd.f32 %v380_v16, %v348_v0  ;;  %v397_v22 = vadd.f32 %v381_v19, %v349_v34  ;;  %v257_v26 = vmul.f32 0.6931472, %v624_v17 }
  0x6c   : > { %v640_v20 = vpop.eup %639  ;;  %v276_v32 = vmax.f32 %v253_v21, -100.0  ;;  %657 = vlog2.f32 %v299_v45  ;;  %v354_v30 = vmul.f32 %v274_v46, %v1001_v42  ;;  %v338_v44 = vmax.f32 %v313_v40, -100.0 }
  0x6d   : > { %v642_v49 = vpop.eup %641  ;;  %v384_v60 = vmul.f32 %v368_v56, %v336_v6  ;;  %v398_v61 = vadd.f32 %v382_v28, %v350_v13  ;;  %v259_v33 = vmul.f32 0.6931472, %v628_v63  ;;  %v277_v35 = vmax.f32 %v255_v25, -100.0 }
  0x6e   : > { %v644_v52 = vpop.eup %643  ;;  %v317_v23 = vmul.f32 0.6931472, %v642_v49  ;;  %v339_v0 = vmax.f32 %v315_v29, -100.0  ;;  %v385_v17 = vmul.f32 %v369_v57, %v337_v8  ;;  %v399_v5 = vadd.f32 %v383_v31, %v351_v41 }
  0x6f   : > { %v646_v43 = vpop.eup %645  ;;  %v319_v55 = vmul.f32 0.6931472, %v644_v52  ;;  %v412_v24 = vsub.f32 0.0, %v396_v27  ;;  %v413_v45 = vsub.f32 0.0, %v397_v22  ;;  %v261_v38 = vmul.f32 0.6931472, %v632_v3 }
  0x70   : > { %v648_v51 = vpop.eup %647  ;;  %v278_v10 = vmax.f32 %v257_v26, -100.0  ;;  %v355_v14 = vmul.f32 %v275_v12, %v1010_v47  ;;  %v340_v36 = vmax.f32 %v317_v23, -100.0  ;;  %v386_v56 = vmul.f32 %v370_v62, %v338_v44 }
  0x71   : > { %v650_v34 = vpop.eup %649  ;;  %v321_v11 = vmul.f32 0.6931472, %v648_v51  ;;  %v400_v63 = vadd.f32 %v384_v60, %v352_v7  ;;  %v414_v13 = vsub.f32 0.0, %v398_v61  ;;  %v263_v15 = vmul.f32 0.6931472, %v638_v39 }
  0x72   : > { %v652_v18 = vpop.eup %651  ;;  %v323_v16 = vmul.f32 0.6931472, %v650_v34  ;;  %v341_v19 = vmax.f32 %v319_v55, -100.0  ;;  %v356_v37 = vmul.f32 %v276_v32, %v1013_v48  ;;  %v387_v41 = vmul.f32 %v371_v1, %v339_v0  ;;  %v235_v55 = vld [vmem:[%s926_s27 + $0x78] sm:$0xff] }
  0x73   : > { %v654_v57 = vpop.eup %653  ;;  %v401_v3 = vadd.f32 %v385_v17, %v353_v50  ;;  %v415_v21 = vsub.f32 0.0, %v399_v5  ;;  %v428_v25 = vadd.f32 %v413_v45, %v412_v24  ;;  %v279_v40 = vmax.f32 %v259_v33, -100.0 }
  0x74   : > { %v656_v46 = vpop.eup %655  ;;  %v325_v6 = vmul.f32 0.6931472, %v652_v18  ;;  %v342_v28 = vmax.f32 %v321_v11, -100.0  ;;  %v357_v42 = vmul.f32 %v277_v35, %v1021_v53  ;;  %v388_v62 = vmul.f32 %v372_v2, %v340_v36 }
  0x75   : > { %v402_v39 = vadd.f32 %v386_v56, %v354_v30  ;;  %v416_v7 = vsub.f32 0.0, %v400_v63  ;;  %v429_v49 = vadd.f32 %v428_v25, %v414_v13  ;;  %v265_v29 = vmul.f32 0.6931472, %v640_v20  ;;  %v234_v30 = vld [vmem:[%s926_s27 + $0x70] sm:$0xff] }
  0x76   : > { %v658_v12 = vpop.eup %657  ;;  %v280_v47 = vmax.f32 %v261_v38, -100.0  ;;  %v327_v1 = vmul.f32 0.6931472, %v654_v57  ;;  %v343_v50 = vmax.f32 %v323_v16, -100.0  ;;  %v1136_v52 = vsub.f32 1.0, %v1021_v53 }
  0x77   : > { %v403_v31 = vadd.f32 %v387_v41, %v355_v14  ;;  %v417_v27 = vsub.f32 0.0, %v401_v3  ;;  %v430_v22 = vadd.f32 %v429_v49, %v415_v21  ;;  %v267_v26 = vmul.f32 0.6931472, %v646_v43 }
  0x78   : > { %v389_v8 = vmul.f32 %v1136_v52, %v341_v19  ;;  %v329_v32 = vmul.f32 0.6931472, %v656_v46  ;;  %v344_v48 = vmax.f32 %v325_v6, -100.0  ;;  %v358_v2 = vmul.f32 %v278_v10, %v1024_v54 }
  0x79   : > { %v1137_v51 = vsub.f32 1.0, %v1024_v54  ;;  %v404_v20 = vadd.f32 %v388_v62, %v356_v37  ;;  %v418_v44 = vsub.f32 0.0, %v402_v39  ;;  %v431_v60 = vadd.f32 %v430_v22, %v416_v7 }
  0x7a   : > { %v281_v61 = vmax.f32 %v263_v15, -100.0  ;;  %v331_v33 = vmul.f32 0.6931472, %v658_v12  ;;  %v345_v53 = vmax.f32 %v327_v1, -100.0  ;;  %v359_v35 = vmul.f32 %v279_v40, %v1031_v59 }
  0x7b   : > { %v390_v23 = vmul.f32 %v1137_v51, %v342_v28  ;;  %v1138_v0 = vsub.f32 1.0, %v1031_v59  ;;  %v405_v34 = vadd.f32 %v389_v8, %v357_v42  ;;  %v419_v17 = vsub.f32 0.0, %v403_v31 }
  0x7c   : > { %v432_v5 = vadd.f32 %v431_v60, %v417_v27  ;;  %v282_v24 = vmax.f32 %v265_v29, -100.0  ;;  %v346_v45 = vmax.f32 %v329_v32, -100.0  ;;  %v360_v54 = vmul.f32 %v280_v47, %v1037_v4 }
  0x7d   : > { %v391_v43 = vmul.f32 %v1138_v0, %v343_v50  ;;  %v378_v18 = vsub.f32 1.0, %v234_v30  ;;  %v1139_v38 = vsub.f32 1.0, %v1037_v4  ;;  %v406_v11 = vadd.f32 %v390_v23, %v358_v2 }
  0x7e   : > { %v420_v14 = vsub.f32 0.0, %v404_v20  ;;  %v433_v36 = vadd.f32 %v432_v5, %v418_v44  ;;  %v283_v56 = vmax.f32 %v267_v26, -100.0  ;;  %v347_v63 = vmax.f32 %v331_v33, -100.0 }
  0x7f   : > { %v392_v10 = vmul.f32 %v1139_v38, %v344_v48  ;;  %v361_v59 = vmul.f32 %v281_v61, %v1043_v9  ;;  %v379_v13 = vsub.f32 1.0, %v235_v55  ;;  %v393_v15 = vmul.f32 %v377_v58, %v345_v53 }
  0x80   : > { %v407_v16 = vadd.f32 %v391_v43, %v359_v35  ;;  %v421_v19 = vsub.f32 0.0, %v405_v34  ;;  %v434_v37 = vadd.f32 %v433_v36, %v419_v17  ;;  %v362_v57 = vmul.f32 %v282_v24, %v234_v30 }
  0x81   : > { %v394_v41 = vmul.f32 %v378_v18, %v346_v45  ;;  %v408_v4 = vadd.f32 %v392_v10, %v360_v54  ;;  %v422_v3 = vsub.f32 0.0, %v406_v11  ;;  %v363_v25 = vmul.f32 %v283_v56, %v235_v55 }
  0x82   : > { %v435_v21 = vadd.f32 %v434_v37, %v420_v14  ;;  %v395_v46 = vmul.f32 %v379_v13, %v347_v63  ;;  %v409_v40 = vadd.f32 %v393_v15, %v361_v59  ;;  %v423_v6 = vsub.f32 0.0, %v407_v16 }
  0x83   : > { %v410_v42 = vadd.f32 %v394_v41, %v362_v57  ;;  %v424_v62 = vsub.f32 0.0, %v408_v4 }
  0x84   : > { %v436_v28 = vadd.f32 %v435_v21, %v421_v19  ;;  %v411_v9 = vadd.f32 %v395_v46, %v363_v25  ;;  %v425_v58 = vsub.f32 0.0, %v409_v40 }
  0x85   : > { %v426_v49 = vsub.f32 0.0, %v410_v42 }
  0x86   : > { %v437_v39 = vadd.f32 %v436_v28, %v422_v3  ;;  %v427_v29 = vsub.f32 0.0, %v411_v9 }
  0x88   : > { %v438_v7 = vadd.f32 %v437_v39, %v423_v6 }
  0x8a   : > { %v439_v12 = vadd.f32 %v438_v7, %v424_v62 }
  0x8c   : > { %v440_v47 = vadd.f32 %v439_v12, %v425_v58 }
  0x8e   : > { %v441_v1 = vadd.f32 %v440_v47, %v426_v49 }
  0x90   : > { %v442_v50 = vadd.f32 %v441_v1, %v427_v29 }
  0x92   : > { %443 = vst [vmem:[%s203_s29] sm:$0xff] %v442_v50 }
  0x93 PF: > { %p15_p11 = scmp.ge.s32.totalorder %s800_s14, 4   ;;  %s1140_s9 = smov %s749_s10 }
  0x94   : > { %s1141_s10 = smov %s753_s11  ;;  %s1142_s11 = smov %s810_s17 }
  0x95   : > { %s1143_s12 = smov %s800_s14  ;;  %17 = sbr.rel (!%p15_p11) target bundleno = 5 (0x5), region = 81 }
  0x9c   :  { %463 = vsyncpa [#allocation3], 1 }
  0x9d   :  { %465 = vsyncpa [#allocation3 + $0x1], 1 }
  0x9e   :  { %466 = vsyncpa [#allocation5], 1 }
  0x9f   :  { %468 = vsyncpa [#allocation5 + $0x1], 1 }

</bundles_post_ra>
